<compile_context>
chip_gen: v7x
topology: tpu7x:2x2x1
jax: 0.10.0
libtpu: 0.0.40
codegen_flags: <defaults>
</compile_context>

<pallas_src>
import functools

import jax
import jax.numpy as jnp
from jax import lax
from jax.experimental import pallas as pl
from jax.experimental.pallas import tpu as pltpu


def _round_up(x, m):
    return (x + m - 1) // m * m


def _vae_kernel(max_action, state_dim, action_dim, latent_dim, out_pad,
                x_ref,
                we1_ref, be1_ref, we2_ref, be2_ref,
                wms_ref, bms_ref,
                wd1_ref, bd1_ref, wd2_ref, bd2_ref,
                out_ref):
    cdt = we1_ref.dtype            # f32 by default; bf16 when weights pre-cast
    x = x_ref[...]                 # (TB, S+A+L) packed [state | action | noise]
    sa = x[:, :state_dim + action_dim]
    s = x[:, :state_dim]
    eps = x[:, state_dim + action_dim:]

    # ---- encoder(cat([state, action], -1)): fused first-layer weight ----
    h = jnp.dot(sa.astype(cdt), we1_ref[...], preferred_element_type=jnp.float32)
    h = jnp.maximum(h + be1_ref[...], 0.0)                              # ReLU (f32)
    lh = (jnp.dot(h.astype(cdt), we2_ref[...], preferred_element_type=jnp.float32)
          + be2_ref[...])                                               # (TB, hidden_dim)

    # ---- fused mean / log_std head: one (hidden_dim, 2*latent) matmul ----
    head = (jnp.dot(lh.astype(cdt), wms_ref[...], preferred_element_type=jnp.float32)
            + bms_ref[...])                                             # (TB, 2L)
    # Lane-dense [mean | std] slab in one shot: exp(clip(.)) on all lanes
    # (EUP slot is otherwise idle), keep raw head values on the mean lanes.
    col = lax.broadcasted_iota(jnp.int32, head.shape, 1)
    exp_head = jnp.exp(jnp.clip(head, -4.0, 15.0))
    mean_std = jnp.where(col < latent_dim, head, exp_head)              # (TB, 2L)
    mean = mean_std[:, :latent_dim]
    std = mean_std[:, latent_dim:]

    # ---- reparameterization: z = mean + std * eps (f32 elementwise) ----
    z = mean + std * eps

    # ---- decode(state, z): in-kernel lane concat + fused first-layer weight ----
    sz = jnp.concatenate([s, z], axis=-1)                               # (TB, S+L)
    d = jnp.dot(sz.astype(cdt), wd1_ref[...], preferred_element_type=jnp.float32)
    d = jnp.maximum(d + bd1_ref[...], 0.0)                              # ReLU (f32)
    recon = (jnp.dot(d.astype(cdt), wd2_ref[...], preferred_element_type=jnp.float32)
             + bd2_ref[...])
    recon = max_action * jnp.tanh(recon)

    # ---- single unmasked, lane-dense (TB, 128) store: [recon | mean | std | 0...] ----
    out = jnp.concatenate([recon, mean_std], axis=-1)
    pad = out_pad - out.shape[-1]
    if pad:
        out = jnp.concatenate(
            [out, jnp.zeros((out.shape[0], pad), out.dtype)], axis=-1)
    out_ref[...] = out


def vae_forward(state, action, noise, params, max_action):
    """VAE forward in one batch-tiled Pallas kernel. Returns (recon, mean, std).

    Matmul weights are consumed in whatever dtype they are stored in
    (use cast_params_for_mxu(params, jnp.bfloat16) once for the v6e/v7x
    bf16-at-the-MXU fast path). Biases / elementwise math stay f32.
    """
    B, S = state.shape
    A = action.shape[1]
    L = noise.shape[1]
    OUT = A + 2 * L
    OUT_PAD = _round_up(OUT, 128)
    F = S + A + L

    # Pack the three per-row inputs into one lane-contiguous slab -> one input
    # DMA per grid step instead of three narrow ones.
    x = jnp.concatenate([state, action, noise], axis=-1).astype(jnp.float32)

    # Batch tile: up to 512 rows, multiple of 16 (bf16 sublane pack). When the
    # batch needs more than one tile, round the tile count up to even so the
    # "parallel" grid axis splits evenly across v7x's two TensorCores
    # (no-op on v5e/v6e). VMEM use is a few hundred KB even at TB=512.
    TB_MAX = 512
    n_tiles = -(-B // TB_MAX)
    if n_tiles > 1 and n_tiles % 2 == 1:
        n_tiles += 1
    TB = _round_up(-(-B // n_tiles), 16)
    B_pad = n_tiles * TB
    if B_pad != B:
        x = jnp.pad(x, ((0, B_pad - B), (0, 0)))

    weight_keys = ("we1", "be1", "we2", "be2", "wms", "bms",
                   "wd1", "bd1", "wd2", "bd2")
    weights = tuple(params[k] for k in weight_keys)

    in_specs = ([pl.BlockSpec((TB, F), lambda i: (i, 0))]
                + [pl.BlockSpec(w.shape, lambda i: (0, 0)) for w in weights])
    out_spec = pl.BlockSpec((TB, OUT_PAD), lambda i: (i, 0))

    Henc = params["we1"].shape[1]
    HD = params["we2"].shape[1]
    Hdec = params["wd1"].shape[1]
    flops = 2 * B_pad * ((S + A) * Henc + Henc * HD + HD * 2 * L
                         + (S + L) * Hdec + Hdec * A)
    transcendentals = B_pad * (2 * L + A)       # exp on head lanes + tanh on recon
    bytes_accessed = (int(x.size) * 4
                      + sum(int(w.size) * w.dtype.itemsize for w in weights)
                      + B_pad * OUT_PAD * 4)
    cost = pl.CostEstimate(flops=int(flops),
                           transcendentals=int(transcendentals),
                           bytes_accessed=int(bytes_accessed))

    kernel = functools.partial(_vae_kernel, float(max_action), S, A, L, OUT_PAD)
    packed = pl.pallas_call(
        kernel,
        out_shape=jax.ShapeDtypeStruct((B_pad, OUT_PAD), jnp.float32),
        grid_spec=pltpu.PrefetchScalarGridSpec(
            num_scalar_prefetch=0,
            grid=(n_tiles,),
            in_specs=in_specs,
            out_specs=out_spec),
        compiler_params=pltpu.CompilerParams(
            dimension_semantics=("parallel",)),
        cost_estimate=cost,
    )(x, *weights)

    recon = packed[:B, :A]
    mean = packed[:B, A:A + L]
    std = packed[:B, A + L:OUT]
    return recon, mean, std


def cast_params_for_mxu(params, dtype):
    """Pre-cast the matmul weights ONCE (v6e/v7x bf16 fast path). Biases stay f32."""
    mm = {"we1", "we2", "wms", "wd1", "wd2"}
    return {k: (v.astype(dtype) if k in mm else v) for k, v in params.items()}


def _linear_init(key, fan_in, fan_out):
    """PyTorch nn.Linear default: U(-1/sqrt(fan_in), 1/sqrt(fan_in))."""
    kw, kb = jax.random.split(key)
    bound = 1.0 / jnp.sqrt(jnp.float32(fan_in))
    w_ = jax.random.uniform(kw, (fan_in, fan_out), jnp.float32, -bound, bound)
    b_ = jax.random.uniform(kb, (1, fan_out), jnp.float32, -bound, bound)
    return w_, b_


def make_params(key, state_dim, action_dim, hidden, hidden_dim, latent_dim):
    keys = jax.random.split(key, 6)
    # encoder: Linear(S+A -> hidden), ReLU, Linear(hidden -> hidden_dim)
    we1, be1 = _linear_init(keys[0], state_dim + action_dim, hidden)
    we2, be2 = _linear_init(keys[1], hidden, hidden_dim)
    # heads, fused into one packed weight: [mean | log_std]
    wm, bm = _linear_init(keys[2], hidden_dim, latent_dim)
    wls, bls = _linear_init(keys[3], hidden_dim, latent_dim)
    # decoder: Linear(S+L -> hidden), ReLU, Linear(hidden -> action_dim)
    wd1, bd1 = _linear_init(keys[4], state_dim + latent_dim, hidden)
    wd2, bd2 = _linear_init(keys[5], hidden, action_dim)
    return {
        "we1": we1, "be1": be1, "we2": we2, "be2": be2,
        "wms": jnp.concatenate([wm, wls], axis=1),
        "bms": jnp.concatenate([bm, bls], axis=1),
        "wd1": wd1, "bd1": bd1, "wd2": wd2, "bd2": bd2,
    }


def _reference(state, action, noise, p, max_action):
    """Pure-JAX reference of the same forward for correctness checks."""
    L = noise.shape[1]
    h = jnp.maximum(
        jnp.concatenate([state, action], -1) @ p["we1"].astype(jnp.float32)
        + p["be1"], 0.0)
    lh = h @ p["we2"].astype(jnp.float32) + p["be2"]
    head = lh @ p["wms"].astype(jnp.float32) + p["bms"]
    mean = head[:, :L]
    log_std = jnp.clip(head[:, L:], -4.0, 15.0)
    std = jnp.exp(log_std)
    z = mean + std * noise
    d = jnp.maximum(
        jnp.concatenate([state, z], -1) @ p["wd1"].astype(jnp.float32)
        + p["bd1"], 0.0)
    recon = max_action * jnp.tanh(d @ p["wd2"].astype(jnp.float32) + p["bd2"])
    return recon, mean, std


if __name__ == "__main__":
    key = jax.random.PRNGKey(0)
    B, STATE_DIM, ACTION_DIM = 4, 16, 8
    HIDDEN, HIDDEN_DIM, LATENT_DIM = 32, 32, 8
    MAX_ACTION = 1.0

    k_state, k_action, k_noise, k_params = jax.random.split(key, 4)
    state = jax.random.normal(k_state, (B, STATE_DIM), jnp.float32)
    action = jax.random.normal(k_action, (B, ACTION_DIM), jnp.float32)
    # torch.randn_like(std) equivalent, sampled outside the kernel deterministically.
    noise = jax.random.normal(k_noise, (B, LATENT_DIM), jnp.float32)

    params = make_params(k_params, STATE_DIM, ACTION_DIM,
                         HIDDEN, HIDDEN_DIM, LATENT_DIM)
    r_ref, m_ref, s_ref = _reference(state, action, noise, params, MAX_ACTION)

    # ---- f32 path (default, strict check; recommended on v5e) ----
    recon, mean, std = vae_forward(state, action, noise, params, MAX_ACTION)
    jax.block_until_ready((recon, mean, std))
    assert jnp.allclose(recon, r_ref, atol=1e-5, rtol=1e-5)
    assert jnp.allclose(mean, m_ref, atol=1e-5, rtol=1e-5)
    assert jnp.allclose(std, s_ref, atol=1e-5, rtol=1e-5)

    # ---- bf16-at-the-MXU path (v6e/v7x fast path; weights pre-cast ONCE) ----
    params_bf16 = cast_params_for_mxu(params, jnp.bfloat16)
    recon_b, mean_b, std_b = vae_forward(state, action, noise, params_bf16,
                                         MAX_ACTION)
    jax.block_until_ready((recon_b, mean_b, std_b))
    assert jnp.allclose(recon_b, r_ref, atol=5e-2, rtol=5e-2)
    assert jnp.allclose(mean_b, m_ref, atol=5e-2, rtol=5e-2)
    # Compare in log-space: exp() amplifies bf16 matmul error near the clamp
    # ceiling, so the robust check is on log_std, not std.
    assert jnp.allclose(jnp.log(std_b), jnp.log(s_ref), atol=5e-2)

    # ---- larger batch: exercises row padding and the bigger batch tile ----
    B2 = 300
    k2s, k2a, k2n = jax.random.split(jax.random.PRNGKey(1), 3)
    state2 = jax.random.normal(k2s, (B2, STATE_DIM), jnp.float32)
    action2 = jax.random.normal(k2a, (B2, ACTION_DIM), jnp.float32)
    noise2 = jax.random.normal(k2n, (B2, LATENT_DIM), jnp.float32)
    r2, m2, s2 = vae_forward(state2, action2, noise2, params, MAX_ACTION)
    jax.block_until_ready((r2, m2, s2))
    r2_ref, m2_ref, s2_ref = _reference(state2, action2, noise2, params, MAX_ACTION)
    assert jnp.allclose(r2, r2_ref, atol=1e-5, rtol=1e-5)
    assert jnp.allclose(m2, m2_ref, atol=1e-5, rtol=1e-5)
    assert jnp.allclose(s2, s2_ref, atol=1e-5, rtol=1e-5)

    print("KERNEL_OK")
</pallas_src>

<mosaic_0001>
module attributes {stable_mosaic.version = 11 : i64} {
  func.func @_vae_kernel(%arg0: i32, %arg1: memref<16x32xf32, #tpu.memory_space<vmem>>, %arg2: memref<24x32xf32, #tpu.memory_space<vmem>>, %arg3: memref<1x32xf32, #tpu.memory_space<vmem>>, %arg4: memref<32x32xf32, #tpu.memory_space<vmem>>, %arg5: memref<1x32xf32, #tpu.memory_space<vmem>>, %arg6: memref<32x16xf32, #tpu.memory_space<vmem>>, %arg7: memref<1x16xf32, #tpu.memory_space<vmem>>, %arg8: memref<24x32xf32, #tpu.memory_space<vmem>>, %arg9: memref<1x32xf32, #tpu.memory_space<vmem>>, %arg10: memref<32x8xf32, #tpu.memory_space<vmem>>, %arg11: memref<1x8xf32, #tpu.memory_space<vmem>>, %arg12: memref<16x128xf32, #tpu.memory_space<vmem>>) attributes {dimension_semantics = [#tpu.dimension_semantics<parallel>], iteration_bounds = array<i64: 1>, scalar_prefetch = 0 : i64, scratch_operands = 0 : i64, tpu.core_type = #tpu.core_type<tc>, window_params = [{transform_indices = @transform_0, window_bounds = array<i64: 16, 32>}, {pipeline_mode = #tpu.pipeline_mode<synchronous>, transform_indices = @transform_1, window_bounds = array<i64: 24, 32>}, {pipeline_mode = #tpu.pipeline_mode<synchronous>, transform_indices = @transform_2, window_bounds = array<i64: 1, 32>}, {pipeline_mode = #tpu.pipeline_mode<synchronous>, transform_indices = @transform_3, window_bounds = array<i64: 32, 32>}, {pipeline_mode = #tpu.pipeline_mode<synchronous>, transform_indices = @transform_4, window_bounds = array<i64: 1, 32>}, {pipeline_mode = #tpu.pipeline_mode<synchronous>, transform_indices = @transform_5, window_bounds = array<i64: 32, 16>}, {pipeline_mode = #tpu.pipeline_mode<synchronous>, transform_indices = @transform_6, window_bounds = array<i64: 1, 16>}, {pipeline_mode = #tpu.pipeline_mode<synchronous>, transform_indices = @transform_7, window_bounds = array<i64: 24, 32>}, {pipeline_mode = #tpu.pipeline_mode<synchronous>, transform_indices = @transform_8, window_bounds = array<i64: 1, 32>}, {pipeline_mode = #tpu.pipeline_mode<synchronous>, transform_indices = @transform_9, window_bounds = array<i64: 32, 8>}, {pipeline_mode = #tpu.pipeline_mode<synchronous>, transform_indices = @transform_10, window_bounds = array<i64: 1, 8>}, {transform_indices = @transform_11, window_bounds = array<i64: 16, 128>}]} {
    %c0 = arith.constant 0 : index
    %c0_0 = arith.constant 0 : index
    %0 = vector.load %arg1[%c0, %c0_0] : memref<16x32xf32, #tpu.memory_space<vmem>>, vector<16x32xf32>
    %1 = vector.extract_strided_slice %0 {offsets = [0, 0], sizes = [16, 24], strides = [1, 1]} : vector<16x32xf32> to vector<16x24xf32>
    %2 = vector.extract_strided_slice %0 {offsets = [0, 0], sizes = [16, 16], strides = [1, 1]} : vector<16x32xf32> to vector<16x16xf32>
    %3 = vector.extract_strided_slice %0 {offsets = [0, 24], sizes = [16, 8], strides = [1, 1]} : vector<16x32xf32> to vector<16x8xf32>
    %c0_1 = arith.constant 0 : index
    %c0_2 = arith.constant 0 : index
    %4 = vector.load %arg2[%c0_1, %c0_2] : memref<24x32xf32, #tpu.memory_space<vmem>>, vector<24x32xf32>
    %cst = arith.constant dense<0.000000e+00> : vector<16x32xf32>
    %5 = tpu.matmul %1, %4, %cst {dimension_numbers = #tpu.dot_dimension_numbers<[1], [0], [0], [1], [0, 0, 1, 1], [], []>} : vector<16x24xf32>, vector<24x32xf32>, vector<16x32xf32> -> vector<16x32xf32>
    %c0_3 = arith.constant 0 : index
    %c0_4 = arith.constant 0 : index
    %6 = vector.load %arg3[%c0_3, %c0_4] : memref<1x32xf32, #tpu.memory_space<vmem>>, vector<1x32xf32>
    %7 = vector.broadcast %6 : vector<1x32xf32> to vector<16x32xf32>
    %8 = arith.addf %5, %7 : vector<16x32xf32>
    %cst_5 = arith.constant 0.000000e+00 : f32
    %9 = vector.broadcast %cst_5 : f32 to vector<16x32xf32>
    %10 = arith.maximumf %8, %9 : vector<16x32xf32>
    %c0_6 = arith.constant 0 : index
    %c0_7 = arith.constant 0 : index
    %11 = vector.load %arg4[%c0_6, %c0_7] : memref<32x32xf32, #tpu.memory_space<vmem>>, vector<32x32xf32>
    %cst_8 = arith.constant dense<0.000000e+00> : vector<16x32xf32>
    %12 = tpu.matmul %10, %11, %cst_8 {dimension_numbers = #tpu.dot_dimension_numbers<[1], [0], [0], [1], [0, 0, 1, 1], [], []>} : vector<16x32xf32>, vector<32x32xf32>, vector<16x32xf32> -> vector<16x32xf32>
    %c0_9 = arith.constant 0 : index
    %c0_10 = arith.constant 0 : index
    %13 = vector.load %arg5[%c0_9, %c0_10] : memref<1x32xf32, #tpu.memory_space<vmem>>, vector<1x32xf32>
    %14 = vector.broadcast %13 : vector<1x32xf32> to vector<16x32xf32>
    %15 = arith.addf %12, %14 : vector<16x32xf32>
    %c0_11 = arith.constant 0 : index
    %c0_12 = arith.constant 0 : index
    %16 = vector.load %arg6[%c0_11, %c0_12] : memref<32x16xf32, #tpu.memory_space<vmem>>, vector<32x16xf32>
    %cst_13 = arith.constant dense<0.000000e+00> : vector<16x16xf32>
    %17 = tpu.matmul %15, %16, %cst_13 {dimension_numbers = #tpu.dot_dimension_numbers<[1], [0], [0], [1], [0, 0, 1, 1], [], []>} : vector<16x32xf32>, vector<32x16xf32>, vector<16x16xf32> -> vector<16x16xf32>
    %c0_14 = arith.constant 0 : index
    %c0_15 = arith.constant 0 : index
    %18 = vector.load %arg7[%c0_14, %c0_15] : memref<1x16xf32, #tpu.memory_space<vmem>>, vector<1x16xf32>
    %19 = vector.broadcast %18 : vector<1x16xf32> to vector<16x16xf32>
    %20 = arith.addf %17, %19 : vector<16x16xf32>
    %21 = tpu.iota {dimensions = array<i32: 1>} : vector<16x16xi32>
    %cst_16 = arith.constant -4.000000e+00 : f32
    %cst_17 = arith.constant 1.500000e+01 : f32
    %22 = vector.broadcast %cst_16 : f32 to vector<16x16xf32>
    %23 = arith.maximumf %22, %20 : vector<16x16xf32>
    %24 = vector.broadcast %cst_17 : f32 to vector<16x16xf32>
    %25 = arith.minimumf %24, %23 : vector<16x16xf32>
    %26 = math.exp %25 : vector<16x16xf32>
    %c8_i32 = arith.constant 8 : i32
    %27 = vector.broadcast %c8_i32 : i32 to vector<16x16xi32>
    %28 = arith.cmpi slt, %21, %27 : vector<16x16xi32>
    %29 = arith.select %28, %20, %26 : vector<16x16xi1>, vector<16x16xf32>
    %30 = vector.extract_strided_slice %29 {offsets = [0, 0], sizes = [16, 8], strides = [1, 1]} : vector<16x16xf32> to vector<16x8xf32>
    %31 = vector.extract_strided_slice %29 {offsets = [0, 8], sizes = [16, 8], strides = [1, 1]} : vector<16x16xf32> to vector<16x8xf32>
    %32 = arith.mulf %31, %3 : vector<16x8xf32>
    %33 = arith.addf %30, %32 : vector<16x8xf32>
    %34 = tpu.concatenate %2, %33 in 1 : vector<16x16xf32>, vector<16x8xf32> -> vector<16x24xf32>
    %c0_18 = arith.constant 0 : index
    %c0_19 = arith.constant 0 : index
    %35 = vector.load %arg8[%c0_18, %c0_19] : memref<24x32xf32, #tpu.memory_space<vmem>>, vector<24x32xf32>
    %cst_20 = arith.constant dense<0.000000e+00> : vector<16x32xf32>
    %36 = tpu.matmul %34, %35, %cst_20 {dimension_numbers = #tpu.dot_dimension_numbers<[1], [0], [0], [1], [0, 0, 1, 1], [], []>} : vector<16x24xf32>, vector<24x32xf32>, vector<16x32xf32> -> vector<16x32xf32>
    %c0_21 = arith.constant 0 : index
    %c0_22 = arith.constant 0 : index
    %37 = vector.load %arg9[%c0_21, %c0_22] : memref<1x32xf32, #tpu.memory_space<vmem>>, vector<1x32xf32>
    %38 = vector.broadcast %37 : vector<1x32xf32> to vector<16x32xf32>
    %39 = arith.addf %36, %38 : vector<16x32xf32>
    %cst_23 = arith.constant 0.000000e+00 : f32
    %40 = vector.broadcast %cst_23 : f32 to vector<16x32xf32>
    %41 = arith.maximumf %39, %40 : vector<16x32xf32>
    %c0_24 = arith.constant 0 : index
    %c0_25 = arith.constant 0 : index
    %42 = vector.load %arg10[%c0_24, %c0_25] : memref<32x8xf32, #tpu.memory_space<vmem>>, vector<32x8xf32>
    %cst_26 = arith.constant dense<0.000000e+00> : vector<16x8xf32>
    %43 = tpu.matmul %41, %42, %cst_26 {dimension_numbers = #tpu.dot_dimension_numbers<[1], [0], [0], [1], [0, 0, 1, 1], [], []>} : vector<16x32xf32>, vector<32x8xf32>, vector<16x8xf32> -> vector<16x8xf32>
    %c0_27 = arith.constant 0 : index
    %c0_28 = arith.constant 0 : index
    %44 = vector.load %arg11[%c0_27, %c0_28] : memref<1x8xf32, #tpu.memory_space<vmem>>, vector<1x8xf32>
    %45 = vector.broadcast %44 : vector<1x8xf32> to vector<16x8xf32>
    %46 = arith.addf %43, %45 : vector<16x8xf32>
    %47 = math.tanh %46 : vector<16x8xf32>
    %cst_29 = arith.constant 1.000000e+00 : f32
    %48 = vector.broadcast %cst_29 : f32 to vector<16x8xf32>
    %49 = arith.mulf %48, %47 : vector<16x8xf32>
    %50 = tpu.concatenate %49, %29 in 1 : vector<16x8xf32>, vector<16x16xf32> -> vector<16x24xf32>
    %cst_30 = arith.constant 0.000000e+00 : f32
    %51 = vector.broadcast %cst_30 : f32 to vector<16x104xf32>
    %52 = tpu.concatenate %50, %51 in 1 : vector<16x24xf32>, vector<16x104xf32> -> vector<16x128xf32>
    %c0_31 = arith.constant 0 : index
    %c0_32 = arith.constant 0 : index
    %53 = vector.load %arg12[%c0_31, %c0_32] : memref<16x128xf32, #tpu.memory_space<vmem>>, vector<16x128xf32>
    tpu.vector_store %arg12[%c0_31, %c0_32], %52 {strides = array<i32>} : memref<16x128xf32, #tpu.memory_space<vmem>>, vector<16x128xf32>,
    return
  }
  func.func @transform_0(%arg0: i32) -> (i32, i32) {
    %c0_i32 = arith.constant 0 : i32
    %c0_i32_0 = arith.constant 0 : i32
    return %arg0, %c0_i32 : i32, i32
  }
  func.func @transform_1(%arg0: i32) -> (i32, i32) {
    %c0_i32 = arith.constant 0 : i32
    %c0_i32_0 = arith.constant 0 : i32
    %c0_i32_1 = arith.constant 0 : i32
    return %c0_i32, %c0_i32_0 : i32, i32
  }
  func.func @transform_2(%arg0: i32) -> (i32, i32) {
    %c0_i32 = arith.constant 0 : i32
    %c0_i32_0 = arith.constant 0 : i32
    %c0_i32_1 = arith.constant 0 : i32
    return %c0_i32, %c0_i32_0 : i32, i32
  }
  func.func @transform_3(%arg0: i32) -> (i32, i32) {
    %c0_i32 = arith.constant 0 : i32
    %c0_i32_0 = arith.constant 0 : i32
    %c0_i32_1 = arith.constant 0 : i32
    return %c0_i32, %c0_i32_0 : i32, i32
  }
  func.func @transform_4(%arg0: i32) -> (i32, i32) {
    %c0_i32 = arith.constant 0 : i32
    %c0_i32_0 = arith.constant 0 : i32
    %c0_i32_1 = arith.constant 0 : i32
    return %c0_i32, %c0_i32_0 : i32, i32
  }
  func.func @transform_5(%arg0: i32) -> (i32, i32) {
    %c0_i32 = arith.constant 0 : i32
    %c0_i32_0 = arith.constant 0 : i32
    %c0_i32_1 = arith.constant 0 : i32
    return %c0_i32, %c0_i32_0 : i32, i32
  }
  func.func @transform_6(%arg0: i32) -> (i32, i32) {
    %c0_i32 = arith.constant 0 : i32
    %c0_i32_0 = arith.constant 0 : i32
    %c0_i32_1 = arith.constant 0 : i32
    return %c0_i32, %c0_i32_0 : i32, i32
  }
  func.func @transform_7(%arg0: i32) -> (i32, i32) {
    %c0_i32 = arith.constant 0 : i32
    %c0_i32_0 = arith.constant 0 : i32
    %c0_i32_1 = arith.constant 0 : i32
    return %c0_i32, %c0_i32_0 : i32, i32
  }
  func.func @transform_8(%arg0: i32) -> (i32, i32) {
    %c0_i32 = arith.constant 0 : i32
    %c0_i32_0 = arith.constant 0 : i32
    %c0_i32_1 = arith.constant 0 : i32
    return %c0_i32, %c0_i32_0 : i32, i32
  }
  func.func @transform_9(%arg0: i32) -> (i32, i32) {
    %c0_i32 = arith.constant 0 : i32
    %c0_i32_0 = arith.constant 0 : i32
    %c0_i32_1 = arith.constant 0 : i32
    return %c0_i32, %c0_i32_0 : i32, i32
  }
  func.func @transform_10(%arg0: i32) -> (i32, i32) {
    %c0_i32 = arith.constant 0 : i32
    %c0_i32_0 = arith.constant 0 : i32
    %c0_i32_1 = arith.constant 0 : i32
    return %c0_i32, %c0_i32_0 : i32, i32
  }
  func.func @transform_11(%arg0: i32) -> (i32, i32) {
    %c0_i32 = arith.constant 0 : i32
    %c0_i32_0 = arith.constant 0 : i32
    return %arg0, %c0_i32 : i32, i32
  }
}

</mosaic_0001>

<bundles_post_ra>
// kernel: tpu_custom_call.1
= control target key start
LH: loop header
LB: loop body
LE: loop exit
PB: predicated region body
PF: predicated region fallthrough
CT: control target
= control target key end

     0   :  { %16 = vsyncpa [#allocation3], 0  ;;  %s974_s0 = inlined_call_operand.hbm [shape: f32[16,32], index: 0, kind: input, shape index: {}]   ;;  %s975_s1 = inlined_call_operand.vmem [shape: f32[24,32], index: 1, kind: input, shape index: {}]   ;;  %s976_s2 = inlined_call_operand.vmem [shape: f32[1,32], index: 2, kind: input, shape index: {}]   ;;  %s977_s3 = inlined_call_operand.vmem [shape: f32[32,32], index: 3, kind: input, shape index: {}]   ;;  %s978_s4 = inlined_call_operand.vmem [shape: f32[1,32], index: 4, kind: input, shape index: {}]   ;;  %s979_s5 = inlined_call_operand.vmem [shape: f32[32,16], index: 5, kind: input, shape index: {}]   ;;  %s980_s6 = inlined_call_operand.vmem [shape: f32[1,16], index: 6, kind: input, shape index: {}]   ;;  %s981_s7 = inlined_call_operand.vmem [shape: f32[24,32], index: 7, kind: input, shape index: {}]   ;;  %s982_s8 = inlined_call_operand.vmem [shape: f32[1,32], index: 8, kind: input, shape index: {}]   ;;  %s983_s9 = inlined_call_operand.vmem [shape: f32[32,8], index: 9, kind: input, shape index: {}]   ;;  %s984_s10 = inlined_call_operand.vmem [shape: f32[1,8], index: 10, kind: input, shape index: {}]   ;;  %s985_s11 = inlined_call_operand.hbm [shape: f32[16,128], index: 11, kind: output, shape index: {}]  }
   0x1   :  { %17 = vsyncpa [#allocation4], 0  ;;  %s784_s17 = smov [#allocation2]   ;;  %s736_s21 = scalar_lea.hbm %s974_s0, 256 }
   0x2   :  { %s23_s18 = sshll.u32 %s784_s17, 4  ;;  %p737_p0 = scmp.ne.s32.totalorder %s974_s0, %s736_s21  ;;  %s24_s18 = int_to_ptr.vmem [resolvable:$true] %s23_s18 }
   0x3   :  { %p740_p1 = scmp.lt.u32.totalorder %s736_s21, %s974_s0 }
   0x5   :  { %p742_p2 = pnand %p740_p1, %p737_p0 }
   0x7   :  { %745 = shalt.err (!%p742_p2)
}
   0x8   :  { %s746_s26 = scalar_lea.vmem %s24_s18, 256  ;;  %p751_p4 = scmp.lt.s32.totalorder %s24_s18, %s24_s18 }
   0x9   :  { %p747_p3 = scmp.ne.s32.totalorder %s24_s18, %s746_s26  ;;  %p752_p5 = scmp.lt.s32.totalorder %s746_s26, %s746_s26 }
   0xb   :  { %p753_p6 = por %p752_p5, %p751_p4 }
   0xd   :  { %p754_p7 = pnand %p753_p6, %p747_p3 }
   0xf   :  { %757 = shalt.err (!%p754_p7)
}
  0x10   :  { %s785_s27 = smov 128   ;;  %s786_s28 = smov 8  }
  0x11   :  { %29 = dma.hbm_to_vmem [thread:$0]  %s974_s0, 256, %s24_s18, [#allocation3], %s785_s27, %s785_s27, %s786_s28  }
  0x12   :  { %780 = dma.done.wait [#allocation3], 256  }
  0x13   :  { %781 = vsyncadd [#allocation3], 4294967040  ;;  %vm65_vm0 = vcmask 195584   ;;  %v55_v0 = vld [vmem:[%s975_s1] sm:$0xff]  ;;  %v56_v1 = vld [vmem:[%s975_s1 + $0x8] sm:$0xff]  ;;  %vm160_vm1 = vcmask 261120   ;;  %v334_v41 = vlaneseq }
  0x14   :  { %v689_v2 = vpack.c.bf16 %v56_v1, %v55_v0  ;;  %v872_v3 = vld [vmem:[#allocation2] sm:$0xff]  ;;  %v57_v4 = vld [vmem:[%s975_s1 + $0x10] sm:$0xff]  ;;  %v150_v6 = vld [vmem:[%s977_s3 + $0x8] sm:$0xff]  ;;  %s788_s20 = smov 120   ;;  %s789_s26 = smov 16   ;;  %vm373_vm3 = vcmask 130048  }
  0x15   :  { %644 = vmatprep.mubr.msk.f32.mxu1 %vm65_vm0, %v872_v3  ;;  %v149_v5 = vld [vmem:[%s977_s3] sm:$0xff]  ;;  %v885_v8 = vld [vmem:[#allocation2 + $0x8] sm:$0xff]  ;;  %v151_v9 = vld [vmem:[%s977_s3 + $0x10] sm:$0xff]  ;;  %v335_v42 = vand.u32 127, %v334_v41  ;;  %vm571_vm4 = vcmask 64512  }
  0x16   :  { %690 = vmatprep.subr.bf16.mxu1 %v689_v2  ;;  %v693_v7 = vpack.c.bf16 %v150_v6, %v149_v5  ;;  %v152_v10 = vld [vmem:[%s977_s3 + $0x18] sm:$0xff]  ;;  %v242_v12 = vld [vmem:[%s979_s5] sm:$0xff]  ;;  %v243_v13 = vld [vmem:[%s979_s5 + $0x8] sm:$0xff] }
  0x17   :  { %692 = vmatpush3.bf16.msra.mxu1 %v689_v2  ;;  %v697_v11 = vpack.c.bf16 %v152_v10, %v151_v9  ;;  %v701_v14 = vpack.c.bf16 %v243_v13, %v242_v12  ;;  %v595_v15 = vld [vmem:[%s976_s2] ss:$0 sm:$0xff]  ;;  %v244_v22 = vld [vmem:[%s979_s5 + $0x10] sm:$0xff]  ;;  %v245_v23 = vld [vmem:[%s979_s5 + $0x18] sm:$0xff]  ;;  %s787_s2 = smov 112   ;;  %vm344_vm2 = vcmp.lt.s32.totalorder %v335_v42, 8 }
  0x18   :  { %642 = vmatprep.subr.mxu1 %v57_v4  ;;  %v705_v24 = vpack.c.bf16 %v245_v23, %v244_v22  ;;  %347 = vrot.lane.b32.xlu0 %v872_v3, %s787_s2  ;;  %v598_v25 = vld [vmem:[%s978_s4] ss:$0 sm:$0xff]  ;;  %v377_v48 = vld [vmem:[%s981_s7 + $0x8] sm:$0xff]  ;;  %v378_v54 = vld [vmem:[%s981_s7 + $0x10] sm:$0xff] }
  0x19   :  { %702 = vmatprep.subr.bf16.mxu0 %v701_v14  ;;  %v601_v30 = vld [vmem:[%s980_s6] ss:$0 sm:$0xff]  ;;  %v470_v56 = vld [vmem:[%s983_s9 + $0x8] sm:$0xff]  ;;  %v471_v2 = vld [vmem:[%s983_s9 + $0x10] sm:$0xff] }
  0x1a   :  { %704 = vmatpush3.bf16.msra.mxu0 %v701_v14  ;;  %v376_v47 = vld [vmem:[%s981_s7] sm:$0xff] }
  0x1b   :  { %643 = vmatpush3.msra.mxu1 %v57_v4  ;;  %706 = vmatprep.subr.bf16.mxu0 %v705_v24  ;;  %v709_v50 = vpack.c.bf16 %v377_v48, %v376_v47  ;;  %v469_v55 = vld [vmem:[%s983_s9] sm:$0xff]  ;;  %v472_v4 = vld [vmem:[%s983_s9 + $0x18] sm:$0xff] }
  0x1c   :  { %645 = vmatmul.mubr.msk.f32.vlgmr.msra.gmra.mrb[0].mxu1 %vm65_vm0, %v885_v8  ;;  %694 = vmatprep.subr.bf16.mxu1 %v693_v7  ;;  %v713_v57 = vpack.c.bf16 %v470_v56, %v469_v55  ;;  %v717_v5 = vpack.c.bf16 %v472_v4, %v471_v2  ;;  %v607_v12 = vld [vmem:[%s984_s10] ss:$0 sm:$0xff] }
  0x1d   :  { %696 = vmatpush3.bf16.msra.mxu1 %v693_v7  ;;  %349 = vrot.lane.b32.xlu0 %v885_v8, %s787_s2 }
  0x1e   :  { %698 = vmatprep.subr.bf16.mxu1 %v697_v11  ;;  %708 = vmatpush3.bf16.msra.mxu0 %v705_v24 }
  0x1f   :  { %714 = vmatprep.subr.bf16.mxu0 %v713_v57 }
  0x21   :  { %700 = vmatpush3.bf16.msra.mxu1 %v697_v11 }
  0x22   :  { %710 = vmatprep.subr.bf16.mxu1 %v709_v50 }
  0x8a   :  { %v348_v43 = vpop.permute.xlu0 %347 }
  0x8f   :  { %v350_v51 = vpop.permute.xlu0 %349 }
  0xef   :  { %v646_v16 = vpop.f32.mrb[0].mxu1 }
  0xf0   :  { %v144_v17 = vadd.f32 %v646_v16, %v595_v15  ;;  %v138_v18 = vpop.f32.mrb[1].mxu1 }
  0xf1   :  { %v139_v19 = vadd.f32 %v595_v15, %v138_v18 }
  0xf2   :  { %v148_v21 = vmax.f32 %v144_v17, 0.0 }
  0xf3   :  { %v147_v20 = vmax.f32 %v139_v19, 0.0 }
  0xf5   :  { %655 = vmatprep.mubr.msk.f32.mxu1 %vm160_vm1, %v147_v20 }
  0xf6   :  { %656 = vmatmul.mubr.msk.f32.vlgmr.msra.gmra.mrb[2].mxu1 %vm160_vm1, %v148_v21 }
  0xf7   :  { %712 = vmatpush3.bf16.msra.mxu1 %v709_v50 }
  0xf8   :  { %673 = vmatprep.subr.mxu1 %v378_v54 }
  0xfb   :  { %674 = vmatpush3.msra.mxu1 %v378_v54 }
 0x1c9   :  { %v657_v26 = vpop.f32.mrb[2].mxu1 }
 0x1ca   :  { %v233_v27 = vpop.f32.mrb[3].mxu1  ;;  %v239_v29 = vadd.f32 %v657_v26, %v598_v25 }
 0x1cb   :  { %v234_v28 = vadd.f32 %v598_v25, %v233_v27 }
 0x1cd   :  { %666 = vmatprep.mubr.msk.f32.mxu0 %vm160_vm1, %v234_v28 }
 0x1ce   :  { %667 = vmatmul.mubr.msk.f32.vlgmr.msra.gmra.mrb[0].mxu0 %vm160_vm1, %v239_v29 }
 0x1cf   :  { %716 = vmatpush3.bf16.msra.mxu0 %v713_v57 }
 0x1d0   :  { %718 = vmatprep.subr.bf16.mxu0 %v717_v5 }
 0x1d3   :  { %720 = vmatpush3.bf16.msra.mxu0 %v717_v5 }
 0x2a1   :  { %v668_v31 = vpop.f32.mrb[0].mxu0 }
 0x2a2   :  { %v331_v32 = vadd.f32 %v668_v31, %v601_v30  ;;  %v325_v33 = vpop.f32.mrb[1].mxu0 }
 0x2a3   :  { %v326_v34 = vadd.f32 %v601_v30, %v325_v33 }
 0x2a4   :  { %v337_v35 = vmax.f32 %v331_v32, -4.0 }
 0x2a5   :  { %v336_v36 = vmax.f32 %v326_v34, -4.0 }
 0x2a6   :  { %v339_v37 = vmin.f32 %v337_v35, 15.0 }
 0x2a7   :  { %v338_v38 = vmin.f32 %v336_v36, 15.0 }
 0x2a8   :  { %v342_v39 = vmul.f32 1.442695, %v339_v37 }
 0x2a9   :  { %v340_v40 = vmul.f32 1.442695, %v338_v38 }
 0x2aa   :  { %728 = vpow2.f32 %v342_v39 }
 0x2ab   :  { %730 = vpow2.f32 %v340_v40 }
 0x2b4   :  { %v729_v44 = vpop.eup %728 }
 0x2b5   :  { %v731_v45 = vpop.eup %730  ;;  %v346_v52 = vsel %vm344_vm2, %v331_v32, %v729_v44 }
 0x2b6   :  { %v345_v46 = vsel %vm344_vm2, %v326_v34, %v731_v45  ;;  %v354_v53 = vmul.f32 %v350_v51, %v346_v52 }
 0x2b7   :  { %v353_v49 = vmul.f32 %v348_v43, %v345_v46 }
 0x2b9   :  { %357 = vrot.lane.b32.xlu1 %v353_v49, %s788_s20 }
 0x2bd   :  { %359 = vrot.lane.b32.xlu1 %v354_v53, %s788_s20 }
 0x32b   :  { %v358_v58 = vpop.permute.xlu1 %357 }
 0x32c   :  { %v363_v59 = vadd.f32 %v358_v58, %v345_v46 }
 0x32e   :  { %367 = vrot.lane.b32.xlu0 %v363_v59, %s789_s26 }
 0x32f   :  { %v360_v60 = vpop.permute.xlu1 %359 }
 0x330   :  { %v364_v61 = vadd.f32 %v360_v60, %v346_v52 }
 0x332   :  { %565 = vrot.lane.b32.xlu0 %v345_v46, %s786_s28  ;;  %369 = vrot.lane.b32.xlu1 %v364_v61, %s789_s26 }
 0x336   :  { %567 = vrot.lane.b32.xlu1 %v346_v52, %s786_s28 }
 0x3a0   :  { %v368_v62 = vpop.permute.xlu0 %367 }
 0x3a1   :  { %v374_v63 = vsel %vm373_vm3, %v872_v3, %v368_v62  ;;  %v604_v3 = vld [vmem:[%s982_s8] ss:$0 sm:$0xff]  ;;  %s790_s8 = smov [#allocation5]  }
 0x3a2   :  { %675 = vmatprep.mubr.msk.f32.mxu1 %vm65_vm0, %v374_v63  ;;  %s583_s9 = sshll.u32 %s790_s8, 4  ;;  %s584_s9 = int_to_ptr.vmem [resolvable:$true] %s583_s9 }
 0x3a3   :  { %s758_s10 = scalar_lea.vmem %s584_s9, 256  ;;  %p763_p9 = scmp.lt.s32.totalorder %s584_s9, %s584_s9 }
 0x3a4   :  { %v370_v0 = vpop.permute.xlu1 %369  ;;  %v566_v20 = vpop.permute.xlu0 %565  ;;  %p759_p8 = scmp.ne.s32.totalorder %s584_s9, %s758_s10  ;;  %p764_p10 = scmp.lt.s32.totalorder %s758_s10, %s758_s10 }
 0x3a5   :  { %v375_v1 = vsel %vm373_vm3, %v885_v8, %v370_v0 }
 0x3a6   :  { %676 = vmatmul.mubr.msk.f32.vlgmr.msra.gmra.mrb[4].mxu1 %vm65_vm0, %v375_v1  ;;  %p765_p11 = por %p764_p10, %p763_p9 }
 0x3a8   :  { %v568_v18 = vpop.permute.xlu1 %567  ;;  %p766_p12 = pnand %p765_p11, %p759_p8 }
 0x479   :  { %v677_v6 = vpop.f32.mrb[4].mxu1 }
 0x47a   :  { %v464_v7 = vadd.f32 %v677_v6, %v604_v3  ;;  %v458_v8 = vpop.f32.mrb[5].mxu1 }
 0x47b   :  { %v459_v9 = vadd.f32 %v604_v3, %v458_v8 }
 0x47c   :  { %v468_v11 = vmax.f32 %v464_v7, 0.0 }
 0x47d   :  { %v467_v10 = vmax.f32 %v459_v9, 0.0 }
 0x47f   :  { %686 = vmatprep.mubr.msk.f32.mxu0 %vm160_vm1, %v467_v10 }
 0x480   :  { %687 = vmatmul.mubr.msk.f32.vlgmr.msra.gmra.mrb[2].mxu0 %vm160_vm1, %v468_v11 }
 0x553   :  { %v688_v13 = vpop.f32.mrb[2].mxu0 }
 0x554   :  { %v558_v14 = vadd.f32 %v688_v13, %v607_v12  ;;  %v552_v15 = vpop.f32.mrb[3].mxu0 }
 0x555   :  { %v553_v16 = vadd.f32 %v607_v12, %v552_v15 }
 0x556   :  { %732 = vtanh.f32 %v558_v14 }
 0x557   :  { %734 = vtanh.f32 %v553_v16 }
 0x560   :  { %v733_v17 = vpop.eup %732 }
 0x561   :  { %v735_v19 = vpop.eup %734  ;;  %v573_v21 = vsel %vm571_vm4, %v733_v17, %v568_v18 }
 0x562   :  { %v572_v22 = vsel %vm571_vm4, %v735_v19, %v566_v20  ;;  %v575_v23 = vsel %vm65_vm0, %v573_v21, 0.0 }
 0x563   :  { %v574_v24 = vsel %vm65_vm0, %v572_v22, 0.0  ;;  %577 = vst [vmem:[#allocation5 + $0x8] sm:$0xff] %v575_v23 }
 0x564   :  { %576 = vst [vmem:[#allocation5] sm:$0xff] %v574_v24 }
 0x565   :  { %769 = shalt.err (!%p766_p12)
}
 0x566   :  { %s770_s17 = scalar_lea.hbm %s985_s11, 256 }
 0x567   :  { %p771_p13 = scmp.ne.s32.totalorder %s985_s11, %s770_s17  ;;  %p774_p0 = scmp.lt.u32.totalorder %s770_s17, %s985_s11 }
 0x569   :  { %p776_p1 = pnand %p774_p0, %p771_p13 }
 0x56b   :  { %779 = shalt.err (!%p776_p1)
}
 0x56c   :  { %589 = dma.vmem_to_hbm [thread:$0]  %s584_s9, 256, %s985_s11, [#allocation4], %s785_s27, %s785_s27, %s786_s28  }
 0x56d   :  { %782 = dma.done.wait [#allocation4], 256  }
 0x56e   :  { %783 = vsyncadd [#allocation4], 4294967040 }
 0x56f   :  { %593 = vsyncpa [#allocation3], 1 }
 0x570   :  { %594 = vsyncpa [#allocation4], 1 }

</bundles_post_ra>
